<compile_context>
chip_gen: v6e
topology: v6e:2x2x1
jax: 0.10.0
libtpu: 0.0.40
codegen_flags: <defaults>
</compile_context>

<pallas_src>
import jax
import jax.numpy as jnp
from jax.experimental import pallas as pl
from jax.experimental.pallas import tpu as pltpu

SUBLANES = 8          # f32 vreg sublanes
LANES = 128           # vreg lanes
ROW_REWARD = 0
ROW_TVL = 1
ROW_ALLOC0 = 2
MAX_BATCH = SUBLANES - ROW_ALLOC0    # up to 6 candidate portfolios per call
MAX_POOLS = LANES                    # grid-less single-vreg version


def _apy_kernel(slab_ref, ta_ref, out_ref):
    """slab_ref: (8, 128) f32 VMEM  [row0=reward, row1=tvl, rows2..7=allocations;
                 lane padding: reward=0, tvl=1, alloc=0 -> padded lanes add 0]
       ta_ref:   (1, 1)  f32 SMEM   total_assets scalar
       out_ref:  (8, 128) f32 VMEM  per-row APY broadcast across lanes
    """
    ta = ta_ref[0, 0]

    slab = slab_ref[...]                                # one unmasked vreg load
    reward = slab[ROW_REWARD:ROW_REWARD + 1, :]         # (1, 128), broadcasts over rows
    tvl = slab[ROW_TVL:ROW_TVL + 1, :]                  # (1, 128)

    # x = allocations * total_assets (module hot path); after cancelling the
    # *ta / /ta pair:  apy_row = sum_lane alloc * reward / (tvl + alloc * ta).
    denom = tvl + slab * ta                             # (8, 128)
    contrib = slab * reward * pl.reciprocal(denom, approx=False)
    # Rows 0/1 compute junk (their "alloc" is reward/tvl); wrapper never reads them.

    row_sum = jnp.sum(contrib, axis=-1, keepdims=True)  # (8, 1) cross-lane reduce
    out_ref[...] = jnp.broadcast_to(row_sum, out_ref.shape)   # lane-dense store


def prepare_inputs(allocations, pools, total_assets):
    """One-time layout prep (keep OUT of the per-step hot path).

    allocations: (N,) or (B, N) f32 candidate allocation vectors, B <= 6, N <= 128.
    pools:       (N, 2) f32 [reward, tvl].
    total_assets: scalar.
    Returns (slab (8, 128) f32, ta (1, 1) f32, batch_size B).
    """
    alloc = jnp.atleast_2d(jnp.asarray(allocations, jnp.float32))     # (B, N)
    b, n = alloc.shape
    assert b <= MAX_BATCH, f"at most {MAX_BATCH} candidate portfolios per call"
    assert n <= MAX_POOLS, f"grid-less version supports at most {MAX_POOLS} pools"

    pools = jnp.asarray(pools, jnp.float32)
    reward_row = jnp.zeros((LANES,), jnp.float32).at[:n].set(pools[:, 0])
    tvl_row = jnp.ones((LANES,), jnp.float32).at[:n].set(pools[:, 1])   # pad tvl=1

    slab = jnp.zeros((SUBLANES, LANES), jnp.float32)
    slab = slab.at[ROW_REWARD, :].set(reward_row)
    slab = slab.at[ROW_TVL, :].set(tvl_row)
    slab = slab.at[ROW_ALLOC0:ROW_ALLOC0 + b, :n].set(alloc)

    ta = jnp.asarray(total_assets, jnp.float32).reshape(1, 1)
    return slab, ta, b


@jax.jit
def portfolio_apy_raw(slab, ta):
    """Hot path: single pallas_call on pre-laid-out inputs. Returns (8, 128)."""
    return pl.pallas_call(
        _apy_kernel,
        out_shape=jax.ShapeDtypeStruct((SUBLANES, LANES), jnp.float32),
        in_specs=[
            pl.BlockSpec(memory_space=pltpu.MemorySpace.VMEM),
            pl.BlockSpec(memory_space=pltpu.MemorySpace.SMEM),
        ],
        out_specs=pl.BlockSpec(memory_space=pltpu.MemorySpace.VMEM),
    )(slab, ta)


def portfolio_apy(allocations, pools, total_assets):
    """Module-equivalent forward: allocations (N,) or (B, N) -> apy scalar / (B,)."""
    alloc = jnp.asarray(allocations, jnp.float32)
    slab, ta, b = prepare_inputs(alloc, pools, total_assets)
    out = portfolio_apy_raw(slab, ta)
    apys = out[ROW_ALLOC0:ROW_ALLOC0 + b, 0]
    return apys[0] if alloc.ndim == 1 else apys


def reference_apy(allocations, pools, total_assets):
    # Plain-jnp reference with the ORIGINAL (un-simplified) formula.
    x = allocations * total_assets
    reward = pools[:, 0]
    tvl = pools[:, 1]
    apy_per_pool = reward / (tvl + x)
    return jnp.sum(x * apy_per_pool) / total_assets


if __name__ == "__main__":
    key = jax.random.PRNGKey(0)
    k1, k2, k3, k4 = jax.random.split(key, 4)

    N = 8  # number of pools

    # Deterministic "parameter" init (the module's init_allocations):
    # a valid allocation vector summing to 1.
    raw = jax.random.uniform(k1, (N,), jnp.float32, minval=0.1, maxval=1.0)
    init_allocations = raw / jnp.sum(raw)

    # pools: (N, 2) -> [reward_budget, current_tvl]
    reward = jax.random.uniform(k2, (N,), jnp.float32, minval=1.0, maxval=10.0)
    tvl = jax.random.uniform(k3, (N,), jnp.float32, minval=100.0, maxval=1000.0)
    pools = jnp.stack([reward, tvl], axis=1)

    total_assets = jnp.float32(250.0)

    # ---- Module-equivalent forward (single allocation vector, B = 1) --------
    apy = jax.block_until_ready(portfolio_apy(init_allocations, pools, total_assets))
    ref = reference_apy(init_allocations, pools, total_assets)
    assert jnp.allclose(apy, ref, rtol=1e-5, atol=1e-6), (apy, ref)

    # ---- Batched path: 3 candidate portfolios evaluated in ONE kernel call --
    noise = jax.random.uniform(k4, (3, N), jnp.float32, minval=0.05, maxval=1.0)
    cand = noise / jnp.sum(noise, axis=1, keepdims=True)           # (3, N)
    apys = jax.block_until_ready(portfolio_apy(cand, pools, total_assets))
    refs = jnp.stack([reference_apy(cand[i], pools, total_assets) for i in range(3)])
    assert jnp.allclose(apys, refs, rtol=1e-5, atol=1e-6), (apys, refs)

    print("KERNEL_OK")
</pallas_src>

<mosaic_0001>
module attributes {stable_mosaic.version = 11 : i64} {
  func.func @_apy_kernel(%arg0: memref<8x128xf32, #tpu.memory_space<vmem>>, %arg1: memref<1x1xf32, #tpu.memory_space<smem>>, %arg2: memref<8x128xf32, #tpu.memory_space<vmem>>) attributes {dimension_semantics = [], scalar_prefetch = 0 : i64, scratch_operands = 0 : i64, tpu.core_type = #tpu.core_type<tc>} {
    %c0 = arith.constant 0 : index
    %c0_0 = arith.constant 0 : index
    %0 = memref.load %arg1[%c0, %c0_0] : memref<1x1xf32, #tpu.memory_space<smem>>
    %c0_1 = arith.constant 0 : index
    %c0_2 = arith.constant 0 : index
    %1 = vector.load %arg0[%c0_1, %c0_2] : memref<8x128xf32, #tpu.memory_space<vmem>>, vector<8x128xf32>
    %2 = vector.extract_strided_slice %1 {offsets = [0, 0], sizes = [1, 128], strides = [1, 1]} : vector<8x128xf32> to vector<1x128xf32>
    %3 = vector.extract_strided_slice %1 {offsets = [1, 0], sizes = [1, 128], strides = [1, 1]} : vector<8x128xf32> to vector<1x128xf32>
    %4 = vector.broadcast %0 : f32 to vector<8x128xf32>
    %5 = arith.mulf %1, %4 : vector<8x128xf32>
    %6 = vector.broadcast %3 : vector<1x128xf32> to vector<8x128xf32>
    %7 = arith.addf %6, %5 : vector<8x128xf32>
    %8 = vector.broadcast %2 : vector<1x128xf32> to vector<8x128xf32>
    %9 = arith.mulf %1, %8 : vector<8x128xf32>
    %10 = tpu.reciprocal %7 : vector<8x128xf32> -> vector<8x128xf32>
    %11 = arith.mulf %9, %10 : vector<8x128xf32>
    %cst = arith.constant dense<0.000000e+00> : vector<8xf32>
    %12 = vector.multi_reduction <add>, %11, %cst [1] : vector<8x128xf32> to vector<8xf32>
    %13 = vector.shape_cast %12 : vector<8xf32> to vector<8x1xf32>
    %14 = vector.shape_cast %13 : vector<8x1xf32> to vector<8x1xf32>
    %15 = vector.broadcast %14 : vector<8x1xf32> to vector<8x128xf32>
    %c0_3 = arith.constant 0 : index
    %c0_4 = arith.constant 0 : index
    %16 = vector.load %arg2[%c0_3, %c0_4] : memref<8x128xf32, #tpu.memory_space<vmem>>, vector<8x128xf32>
    tpu.vector_store %arg2[%c0_3, %c0_4], %15 {strides = array<i32>} : memref<8x128xf32, #tpu.memory_space<vmem>>, vector<8x128xf32>,
    return
  }
}

</mosaic_0001>

<bundles_post_ra>
// kernel: portfolio_apy_raw.1
= control target key start
LH: loop header
LB: loop body
LE: loop exit
PB: predicated region body
PF: predicated region fallthrough
CT: control target
= control target key end

     0   :  { %8 = vsyncpa [#allocation4], 0  ;;  %s133_s0 = inlined_call_operand.hbm [shape: f32[8,128], index: 0, kind: input, shape index: {}]   ;;  %s134_s1 = inlined_call_operand.<no memory space> [shape: f32[1,1], index: 1, kind: input, shape index: {}]   ;;  %s135_s2 = inlined_call_operand.hbm [shape: f32[8,128], index: 2, kind: output, shape index: {}]  }
   0x1   :  { %9 = vsyncpa [#allocation5], 0  ;;  %s107_s9 = smov [#allocation3]  }
   0x2   :  { %s16_s10 = sshll.u32 %s107_s9, 4  ;;  %s17_s10 = int_to_ptr.vmem [resolvable:$true] %s16_s10 }
   0x3   :  { %s71_s11 = scalar_lea.vmem %s17_s10, 128  ;;  %p76_p1 = scmp.lt.s32.totalorder %s17_s10, %s17_s10 }
   0x4   :  { %p72_p0 = scmp.ne.s32.totalorder %s17_s10, %s71_s11  ;;  %p77_p2 = scmp.lt.s32.totalorder %s71_s11, %s71_s11 }
   0x6   :  { %p78_p3 = por %p77_p2, %p76_p1 }
   0x8   :  { %p79_p4 = pnand %p78_p3, %p72_p0 }
   0xa   :  { %82 = shalt.err (!%p79_p4)
}
   0xb   :  { %19 = dma.hbm_to_vmem [thread:$0]  %s133_s0, 128, %s17_s10, [#allocation4]  }
   0xc   :  { %103 = dma.done.wait [#allocation4], 128  }
   0xd   :  { %104 = vsyncadd [#allocation4], 4294967168  ;;  %v29_v0 = vlaneseq  ;;  %v27_v3 = vstv %s134_s1  ;;  %v26_v4 = vld [vmem:[#allocation3] sm:$0xff]  ;;  %s108_s0 = smov [#allocation6]  }
   0xe   :  { %v28_v5 = vmul.f32 %v27_v3, %v26_v4  ;;  %s50_s16 = sshll.u32 %s108_s0, 4  ;;  %s51_s16 = int_to_ptr.vmem [resolvable:$true] %s50_s16 }
   0xf   :  { %v30_v1 = vshrl.u32 %v29_v0, 7  ;;  %s83_s17 = scalar_lea.vmem %s51_s16, 128  ;;  %p88_p6 = scmp.lt.s32.totalorder %s51_s16, %s51_s16 }
  0x10   :  { %p84_p5 = scmp.ne.s32.totalorder %s51_s16, %s83_s17  ;;  %p89_p7 = scmp.lt.s32.totalorder %s83_s17, %s83_s17 }
  0x11   :  { %v31_v2 = vsub.s32 1, %v30_v1  ;;  %v36_v8 = vsub.s32 0, %v30_v1 }
  0x12   :  { %p90_p8 = por %p89_p7, %p88_p6 }
  0x13   :  { %v32_v6 = vrot.slane %v26_v4, %v31_v2  ;;  %v37_v9 = vrot.slane %v26_v4, %v36_v8 }
  0x14   :  { %p91_p9 = pnand %p90_p8, %p84_p5 }
  0x15   :  { %v33_v7 = vadd.f32 %v32_v6, %v28_v5  ;;  %v38_v10 = vmul.f32 %v37_v9, %v26_v4 }
  0x17   :  { %61 = vrcp.f32 %v33_v7 }
  0x24   :  { %v62_v11 = vpop.eup %61 }
  0x25   :  { %v40_v12 = vmul.f32 %v62_v11, %v38_v10 }
  0x27   :  { %41 = vadd.xlane.f32.xlu0 %v40_v12 }
  0xb0   :  { %v42_v13 = vpop.xlane.xlu0 %41 }
  0xb1   :  { %43 = vst [vmem:[#allocation6] sm:$0xff] %v42_v13 }
  0xb2   :  { %94 = shalt.err (!%p91_p9)
}
  0xb3   :  { %53 = dma.vmem_to_hbm [thread:$0]  %s51_s16, 128, %s135_s2, [#allocation5]  }
  0xb4   :  { %105 = dma.done.wait [#allocation5], 128  }
  0xb5   :  { %106 = vsyncadd [#allocation5], 4294967168 }
  0xb6   :  { %57 = vsyncpa [#allocation4], 1 }
  0xb7   :  { %58 = vsyncpa [#allocation5], 1 }

</bundles_post_ra>
